<compile_context>
chip_gen: v7x
topology: tpu7x:2x2x1
jax: 0.10.0
libtpu: 0.0.40
codegen_flags: <defaults>
</compile_context>

<pallas_src>
import jax
import jax.numpy as jnp
from jax.experimental import pallas as pl
from jax.experimental.pallas import tpu as pltpu

EPS = 1e-12  # matches torch.nn.functional.normalize default eps


def _round_up(a, b):
    return ((a + b - 1) // b) * b


def arcface_linear_kernel(inv_x_ref, x_ref, w_ref, o_ref, acc_ref, colsq_ref):
    # inv_x_ref : (B, 1)    f32, precomputed 1/max(||x_row||, EPS)
    # x_ref     : (B, TH)   native dtype, hidden tile of the batch block
    # w_ref     : (TH, TN)  native dtype, (hidden, id) tile of W
    # o_ref     : (B, TN)   output tile (resident across the hidden axis)
    # acc_ref   : (B, TN)   f32 matmul accumulator scratch
    # colsq_ref : (8, TN)   f32 per-column sum-of-squares scratch (rows equal)
    k = pl.program_id(1)

    @pl.when(k == 0)
    def _init():
        acc_ref[...] = jnp.zeros_like(acc_ref)
        colsq_ref[...] = jnp.zeros_like(colsq_ref)

    x = x_ref[...]
    w = w_ref[...]

    # Cosine numerator: raw MXU matmul, f32 accumulation across hidden tiles.
    acc_ref[...] += jnp.dot(x, w, preferred_element_type=jnp.float32)

    # Per-column sum of squares: square in the native dtype on the VPU (no f32
    # astype copy) and reduce over the hidden dim on the MXU (ones @ w^2).
    wsq = w * w
    ones = jnp.ones((8, wsq.shape[0]), dtype=wsq.dtype)
    colsq_ref[...] += jnp.dot(ones, wsq, preferred_element_type=jnp.float32)

    @pl.when(k == pl.num_programs(1) - 1)
    def _finalize():
        # rsqrt(max(sumsq, EPS^2)) == 1 / max(||col||, EPS).  All 8 rows of
        # colsq are identical; take the first as the (1, TN) column scale.
        inv_w = jax.lax.rsqrt(jnp.maximum(colsq_ref[...][0:1, :], EPS * EPS))
        o_ref[...] = (acc_ref[...] * inv_x_ref[...] * inv_w).astype(o_ref.dtype)


def arcface_linear(x, W, *, weight_dtype=None, out_dtype=jnp.float32,
                   tn=None, th=None):
    """x: (B, H), W: (H, N) -> (B, N) cosine-similarity logits (out_dtype)."""
    B, H = x.shape
    H2, N = W.shape
    assert H == H2, "hidden_dim mismatch between x and W"

    # Row scale hoisted out of the kernel; computed in f32 before any
    # low-precision cast for best accuracy.
    xf = x.astype(jnp.float32)
    inv_x = jax.lax.rsqrt(
        jnp.maximum(jnp.sum(xf * xf, axis=1, keepdims=True), EPS * EPS))

    # Optional low-precision streaming of W (and x so the MXU runs a single
    # native-precision pass).  Accumulation stays f32 in-kernel.
    if weight_dtype is not None:
        W = W.astype(weight_dtype)
        x = x.astype(weight_dtype)
    elif x.dtype != W.dtype:
        x = x.astype(W.dtype)

    x_item = jnp.dtype(x.dtype).itemsize
    w_item = jnp.dtype(W.dtype).itemsize
    o_item = jnp.dtype(out_dtype).itemsize

    # Generation-aware VMEM budget (v5e/v6e: 128 MiB, v7x: 64 MiB).
    try:
        cap = int(getattr(pltpu.get_tpu_info(), "vmem_capacity_bytes", 0))
    except Exception:
        cap = 0
    if cap <= 0:
        cap = 64 << 20  # conservative (fits v7x)
    budget = int(cap * 0.60)

    # --- id (N) tile width --------------------------------------------------
    n_lane = _round_up(N, 128)
    if tn is None:
        tn_eff = 2048 if cap >= (100 << 20) else 1024
    else:
        tn_eff = _round_up(tn, 128)
    tn_eff = min(tn_eff, n_lane)
    # Keep >= 2 id tiles so the "parallel" axis can split across both v7x
    # TensorCores (harmless extra grid steps on single-TC v5e/v6e).
    if n_lane >= 256:
        tn_eff = min(tn_eff, _round_up(n_lane // 2, 128))

    # --- hidden (H) tile height ---------------------------------------------
    th_eff = H if th is None else min(_round_up(th, 128), _round_up(H, 128))

    def vmem_need(tn_, th_):
        return (2 * th_ * tn_ * w_item      # W tile, double-buffered
                + 2 * B * th_ * x_item      # x tile, double-buffered
                + 2 * B * tn_ * o_item      # output tile, double-buffered
                + B * tn_ * 4               # f32 accumulator scratch
                + 8 * tn_ * 4               # column sum-of-squares scratch
                + 2 * B * 4                 # inv_x, double-buffered (tiny)
                + (2 << 20))                # Mosaic internal scratch margin

    # Shrink the id tile first (keep >=512 lanes so output stores stay dense),
    # then tile the hidden dim, then shrink the id tile to the minimum.
    if tn is None:
        while vmem_need(tn_eff, th_eff) > budget and tn_eff > min(512, n_lane):
            tn_eff -= 128
    if th is None and vmem_need(tn_eff, th_eff) > budget and H > 128:
        th_eff = _round_up(H, 128)
        while vmem_need(tn_eff, th_eff) > budget and th_eff > 128:
            th_eff = max(128, _round_up(th_eff // 2, 128))
    if tn is None:
        while vmem_need(tn_eff, th_eff) > budget and tn_eff > 128:
            tn_eff -= 128

    # --- padding (zero rows/columns contribute exactly-zero logits) ----------
    N_pad = _round_up(N, tn_eff)
    H_pad = _round_up(H, th_eff)
    W_p = W
    x_p = x
    if N_pad != N or H_pad != H:
        W_p = jnp.pad(W, ((0, H_pad - H), (0, N_pad - N)))
    if H_pad != H:
        x_p = jnp.pad(x, ((0, 0), (0, H_pad - H)))

    gn = N_pad // tn_eff
    gk = H_pad // th_eff

    cost = pl.CostEstimate(
        flops=2 * (B + 8) * H_pad * N_pad,          # main matmul + MXU colsumsq
        transcendentals=N_pad,                      # per-column rsqrt
        bytes_accessed=(H_pad * N_pad * w_item      # W streamed once
                        + gn * B * H_pad * x_item   # x re-read per id tile
                        + B * N_pad * o_item),
    )

    need = vmem_need(tn_eff, th_eff)
    vmem_limit = int(min(int(cap * 0.85), max(32 << 20, need + (8 << 20))))

    out = pl.pallas_call(
        arcface_linear_kernel,
        out_shape=jax.ShapeDtypeStruct((B, N_pad), out_dtype),
        grid_spec=pltpu.PrefetchScalarGridSpec(
            num_scalar_prefetch=0,
            grid=(gn, gk),
            in_specs=[
                # Precomputed row scales (tiny, constant block).
                pl.BlockSpec((B, 1), lambda j, k: (0, 0)),
                # Hidden tile of the batch block.
                pl.BlockSpec((B, th_eff), lambda j, k: (0, k)),
                # (hidden, id) tile of W.
                pl.BlockSpec((th_eff, tn_eff), lambda j, k: (k, j)),
            ],
            out_specs=pl.BlockSpec((B, tn_eff), lambda j, k: (0, j)),
            scratch_shapes=[
                pltpu.VMEM((B, tn_eff), jnp.float32),   # matmul accumulator
                pltpu.VMEM((8, tn_eff), jnp.float32),   # column sum-of-squares
            ],
        ),
        compiler_params=pltpu.CompilerParams(
            dimension_semantics=("parallel", "arbitrary"),
            vmem_limit_bytes=vmem_limit,
        ),
        cost_estimate=cost,
    )(inv_x, x_p, W_p)

    return out[:, :N] if N_pad != N else out


def _reference(x, W):
    x_n = x / jnp.maximum(jnp.linalg.norm(x, axis=1, keepdims=True), EPS)
    w_n = W / jnp.maximum(jnp.linalg.norm(W, axis=0, keepdims=True), EPS)
    return x_n @ w_n


if __name__ == "__main__":
    # Small shapes consistent with the module: batch=8, hidden_dim=128,
    # num_ids=300 (not a multiple of 128 to exercise id padding).
    B, H, N = 8, 128, 300

    key = jax.random.PRNGKey(0)
    kx, kw = jax.random.split(key)
    x = jax.random.normal(kx, (B, H), dtype=jnp.float32)
    W = jax.random.normal(kw, (H, N), dtype=jnp.float32) * 0.02

    ref = _reference(x, W)

    # f32 path, auto tiles (>=2 id tiles + id padding exercised).
    out = jax.block_until_ready(arcface_linear(x, W))
    assert out.shape == (B, N)
    assert jnp.allclose(out, ref, atol=1e-3, rtol=1e-3)

    # Multi-tile id AND hidden path (exercises the k-axis accumulator/finalize).
    x2 = jax.random.normal(jax.random.PRNGKey(1), (B, 256), dtype=jnp.float32)
    W2 = jax.random.normal(jax.random.PRNGKey(2), (256, 384), dtype=jnp.float32) * 0.02
    ref2 = _reference(x2, W2)
    out2 = jax.block_until_ready(arcface_linear(x2, W2, tn=128, th=128))
    assert out2.shape == (B, 384)
    assert jnp.allclose(out2, ref2, atol=1e-3, rtol=1e-3)

    # bf16-streamed W (halved HBM traffic), f32 accumulation in-kernel.
    out_bf16 = jax.block_until_ready(arcface_linear(x, W, weight_dtype=jnp.bfloat16))
    assert out_bf16.shape == (B, N)
    assert jnp.allclose(out_bf16, ref, atol=1e-2, rtol=1e-2)

    print("KERNEL_OK")
</pallas_src>

<mosaic_0001>
module attributes {stable_mosaic.version = 11 : i64} {
  func.func @arcface_linear_kernel(%arg0: i32, %arg1: i32, %arg2: memref<8x1xf32, #tpu.memory_space<vmem>>, %arg3: memref<8x128xf32, #tpu.memory_space<vmem>>, %arg4: memref<128x256xf32, #tpu.memory_space<vmem>>, %arg5: memref<8x256xf32, #tpu.memory_space<vmem>>, %arg6: memref<8x256xf32, #tpu.memory_space<vmem>>, %arg7: memref<8x256xf32, #tpu.memory_space<vmem>>) attributes {dimension_semantics = [#tpu.dimension_semantics<parallel>, #tpu.dimension_semantics<arbitrary>], iteration_bounds = array<i64: 2, 1>, scalar_prefetch = 0 : i64, scratch_operands = 2 : i64, tpu.core_type = #tpu.core_type<tc>, window_params = [{pipeline_mode = #tpu.pipeline_mode<synchronous>, transform_indices = @transform_0, window_bounds = array<i64: 8, 1>}, {transform_indices = @transform_1, window_bounds = array<i64: 8, 128>}, {transform_indices = @transform_2, window_bounds = array<i64: 128, 256>}, {transform_indices = @transform_3, window_bounds = array<i64: 8, 256>}]} {
    %c0_i32 = arith.constant 0 : i32
    %0 = arith.cmpi eq, %arg1, %c0_i32 : i32
    %1 = arith.extui %0 : i1 to i32
    %c0_i32_0 = arith.constant 0 : i32
    %2 = arith.cmpi ne, %1, %c0_i32_0 : i32
    scf.if %2 {
      %cst_16 = arith.constant 0.000000e+00 : f32
      %18 = vector.broadcast %cst_16 : f32 to vector<8x256xf32>
      %c0_17 = arith.constant 0 : index
      %c0_18 = arith.constant 0 : index
      %19 = vector.load %arg6[%c0_17, %c0_18] : memref<8x256xf32, #tpu.memory_space<vmem>>, vector<8x256xf32>
      tpu.vector_store %arg6[%c0_17, %c0_18], %18 {strides = array<i32>} : memref<8x256xf32, #tpu.memory_space<vmem>>, vector<8x256xf32>,
      %cst_19 = arith.constant 0.000000e+00 : f32
      %20 = vector.broadcast %cst_19 : f32 to vector<8x256xf32>
      %c0_20 = arith.constant 0 : index
      %c0_21 = arith.constant 0 : index
      %21 = vector.load %arg7[%c0_20, %c0_21] : memref<8x256xf32, #tpu.memory_space<vmem>>, vector<8x256xf32>
      tpu.vector_store %arg7[%c0_20, %c0_21], %20 {strides = array<i32>} : memref<8x256xf32, #tpu.memory_space<vmem>>, vector<8x256xf32>,
    } else {
    }
    %c0 = arith.constant 0 : index
    %c0_1 = arith.constant 0 : index
    %3 = vector.load %arg3[%c0, %c0_1] : memref<8x128xf32, #tpu.memory_space<vmem>>, vector<8x128xf32>
    %c0_2 = arith.constant 0 : index
    %c0_3 = arith.constant 0 : index
    %4 = vector.load %arg4[%c0_2, %c0_3] : memref<128x256xf32, #tpu.memory_space<vmem>>, vector<128x256xf32>
    %c0_4 = arith.constant 0 : index
    %c0_5 = arith.constant 0 : index
    %5 = vector.load %arg6[%c0_4, %c0_5] : memref<8x256xf32, #tpu.memory_space<vmem>>, vector<8x256xf32>
    %cst = arith.constant dense<0.000000e+00> : vector<8x256xf32>
    %6 = tpu.matmul %3, %4, %cst {dimension_numbers = #tpu.dot_dimension_numbers<[1], [0], [0], [1], [0, 0, 1, 1], [], []>} : vector<8x128xf32>, vector<128x256xf32>, vector<8x256xf32> -> vector<8x256xf32>
    %7 = arith.addf %5, %6 : vector<8x256xf32>
    %c0_6 = arith.constant 0 : index
    %c0_7 = arith.constant 0 : index
    %8 = vector.load %arg6[%c0_6, %c0_7] : memref<8x256xf32, #tpu.memory_space<vmem>>, vector<8x256xf32>
    tpu.vector_store %arg6[%c0_6, %c0_7], %7 {strides = array<i32>} : memref<8x256xf32, #tpu.memory_space<vmem>>, vector<8x256xf32>,
    %9 = arith.mulf %4, %4 : vector<128x256xf32>
    %cst_8 = arith.constant 1.000000e+00 : f32
    %10 = vector.broadcast %cst_8 : f32 to vector<8x128xf32>
    %c0_9 = arith.constant 0 : index
    %c0_10 = arith.constant 0 : index
    %11 = vector.load %arg7[%c0_9, %c0_10] : memref<8x256xf32, #tpu.memory_space<vmem>>, vector<8x256xf32>
    %cst_11 = arith.constant dense<0.000000e+00> : vector<8x256xf32>
    %12 = tpu.matmul %10, %9, %cst_11 {dimension_numbers = #tpu.dot_dimension_numbers<[1], [0], [0], [1], [0, 0, 1, 1], [], []>} : vector<8x128xf32>, vector<128x256xf32>, vector<8x256xf32> -> vector<8x256xf32>
    %13 = arith.addf %11, %12 : vector<8x256xf32>
    %c0_12 = arith.constant 0 : index
    %c0_13 = arith.constant 0 : index
    %14 = vector.load %arg7[%c0_12, %c0_13] : memref<8x256xf32, #tpu.memory_space<vmem>>, vector<8x256xf32>
    tpu.vector_store %arg7[%c0_12, %c0_13], %13 {strides = array<i32>} : memref<8x256xf32, #tpu.memory_space<vmem>>, vector<8x256xf32>,
    %c0_i32_14 = arith.constant 0 : i32
    %15 = arith.cmpi eq, %arg1, %c0_i32_14 : i32
    %16 = arith.extui %15 : i1 to i32
    %c0_i32_15 = arith.constant 0 : i32
    %17 = arith.cmpi ne, %16, %c0_i32_15 : i32
    scf.if %17 {
      %c0_16 = arith.constant 0 : index
      %c0_17 = arith.constant 0 : index
      %18 = vector.load %arg7[%c0_16, %c0_17] : memref<8x256xf32, #tpu.memory_space<vmem>>, vector<8x256xf32>
      %19 = vector.extract_strided_slice %18 {offsets = [0, 0], sizes = [1, 256], strides = [1, 1]} : vector<8x256xf32> to vector<1x256xf32>
      %cst_18 = arith.constant 1.000000e-24 : f32
      %20 = vector.broadcast %cst_18 : f32 to vector<1x256xf32>
      %21 = arith.maximumf %19, %20 : vector<1x256xf32>
      %22 = math.rsqrt %21 : vector<1x256xf32>
      %c0_19 = arith.constant 0 : index
      %c0_20 = arith.constant 0 : index
      %23 = vector.load %arg6[%c0_19, %c0_20] : memref<8x256xf32, #tpu.memory_space<vmem>>, vector<8x256xf32>
      %c0_21 = arith.constant 0 : index
      %c0_22 = arith.constant 0 : index
      %24 = vector.load %arg2[%c0_21, %c0_22] : memref<8x1xf32, #tpu.memory_space<vmem>>, vector<8x1xf32>
      %25 = vector.broadcast %24 : vector<8x1xf32> to vector<8x256xf32>
      %26 = arith.mulf %23, %25 : vector<8x256xf32>
      %27 = vector.broadcast %22 : vector<1x256xf32> to vector<8x256xf32>
      %28 = arith.mulf %26, %27 : vector<8x256xf32>
      %c0_23 = arith.constant 0 : index
      %c0_24 = arith.constant 0 : index
      %29 = vector.load %arg5[%c0_23, %c0_24] : memref<8x256xf32, #tpu.memory_space<vmem>>, vector<8x256xf32>
      tpu.vector_store %arg5[%c0_23, %c0_24], %28 {strides = array<i32>} : memref<8x256xf32, #tpu.memory_space<vmem>>, vector<8x256xf32>,
    } else {
    }
    return
  }
  func.func @transform_0(%arg0: i32, %arg1: i32) -> (i32, i32) {
    %c0_i32 = arith.constant 0 : i32
    %c0_i32_0 = arith.constant 0 : i32
    %c0_i32_1 = arith.constant 0 : i32
    return %c0_i32, %c0_i32_0 : i32, i32
  }
  func.func @transform_1(%arg0: i32, %arg1: i32) -> (i32, i32) {
    %c0_i32 = arith.constant 0 : i32
    %c0_i32_0 = arith.constant 0 : i32
    return %c0_i32, %arg1 : i32, i32
  }
  func.func @transform_2(%arg0: i32, %arg1: i32) -> (i32, i32) {
    %c0_i32 = arith.constant 0 : i32
    return %arg1, %arg0 : i32, i32
  }
  func.func @transform_3(%arg0: i32, %arg1: i32) -> (i32, i32) {
    %c0_i32 = arith.constant 0 : i32
    %c0_i32_0 = arith.constant 0 : i32
    return %c0_i32, %arg0 : i32, i32
  }
}

</mosaic_0001>

<bundles_post_ra>
// kernel: tpu_custom_call.1
= control target key start
LH: loop header
LB: loop body
LE: loop exit
PB: predicated region body
PF: predicated region fallthrough
CT: control target
= control target key end

     0   :  { %8 = vsyncpa [#allocation5], 0  ;;  %s1104_s0 = inlined_call_operand.vmem [shape: f32[8,1], index: 0, kind: input, shape index: {}]   ;;  %s1105_s1 = inlined_call_operand.vmem [shape: f32[8,128], index: 1, kind: input, shape index: {}]   ;;  %s1106_s2 = inlined_call_operand.hbm [shape: f32[128,512], index: 2, kind: input, shape index: {}]   ;;  %s1107_s3 = inlined_call_operand.hbm [shape: f32[8,512], index: 3, kind: output, shape index: {}]  }
   0x1   :  { %10 = vsyncpa [#allocation5 + $0x1], 0 }
   0x2   :  { %11 = vsyncpa [#allocation6], 0 }
   0x3   :  { %13 = vsyncpa [#allocation6 + $0x1], 0  ;;  %s892_s12 = smov 0   ;;  %s894_s13 = smov 0  }
   0x4   :  { %s896_s14 = smov 0   ;;  %s898_s15 = smov 0  }
   0x5   :  { %s900_s16 = smov 0   ;;  %s902_s17 = smov 0  }
   0x6 LB: > { %s595_s18 = sadd.s32 4294967295, %s862_s17   ;;  %s596_s19 = sadd.s32 4294967294, %s862_s17   ;;  %s862_s17 = sphi %s902_s17, %s19_s17   ;;  %s858_s16 = sphi %s900_s16, %s1121_s16   ;;  %s854_s15 = sphi %s898_s15, %s1120_s15   ;;  %s850_s14 = sphi %s896_s14, %s1119_s14   ;;  %s846_s13 = sphi %s894_s13, %s1118_s13   ;;  %s842_s12 = sphi %s892_s12, %s1117_s12  }
   0x7   : > { %s31_s20 = sadd.s32 1, %s858_s16  ;;  %s87_s21 = sadd.s32 1, %s850_s14 }
   0x8   : > { %p33_p0 = scmp.ge.s32.totalorder %s31_s20, 2  ;;  %p94_p1 = scmp.ne.s32.totalorder %s850_s14, %s846_s13 }
   0x9   : > { %p95_p2 = scmp.eq.s32.totalorder %s862_s17, 0  ;;  %p100_p3 = scmp.ne.s32.totalorder %s846_s13, %s842_s12 }
   0xa   : > { %s1123_s20 = smov (%p33_p0, %s31_s20), 0  ;;  %p101_p5 = scmp.eq.s32.totalorder %s595_s18, 0 }
   0xb   : > { %p933_p4 = por %p95_p2, %p94_p1  ;;  %s83_s23 = ssub.s32 %s858_s16, %s1123_s20 }
   0xc   : > { %p124_p6 = scmp.eq.s32.totalorder %s595_s18, 1  ;;  %p85_p7 = scmp.eq.s32.totalorder %s83_s23, 0 }
   0xd   : > { %p939_p8 = por %p101_p5, %p100_p3  ;;  %p130_p10 = scmp.eq.s32.totalorder %s596_s19, 1 }
   0xe   : > { %p943_p9 = por %p124_p6, %p94_p1  ;;  %p689_p13 = scmp.lt.s32.totalorder %s862_s17, 2 }
   0xf   : > { %s948_s26 = scalar_select %p85_p7, %s850_s14, %s87_s21  }
  0x10   : > { %s1111_s25 = scalar_select %p943_p9, 1, 0 }
  0x11   : > { %p950_p11 = por %p130_p10, %p100_p3  ;;  %s160_s28 = sand.u32 1, %s850_s14  }
  0x12   : > { %s600_s29 = sshll.u32 %s160_s28, 8  ;;  %s611_s30 = sshll.u32 %s858_s16, 8 }
  0x13   : > { %s1112_s27 = scalar_select %p950_p11, 1, 0 }
  0x14   : > { %s961_s6 = scalar_lea.hbm %s1106_s2, %s611_s30  ;;  %s164_s7 = scalar_lea.vmem [#allocation4], %s600_s29 }
  0x15   : > { %s174_s8 = sshll.u32 %s164_s7, 4  ;;  %p967_p0 = pnand %p689_p13, %p933_p4  ;;  %s963_s8 = int_to_ptr.vmem [resolvable:$true] %s174_s8 }
  0x16   : > { %s971_s10 = scalar_lea.sflag [#allocation5], %s160_s28  ;;  %s750_s11 = scalar_lea.hbm %s961_s6, 4096 }
  0x17   : > { %p751_p1 = scmp.ne.s32.totalorder %s961_s6, %s750_s11  ;;  %p752_p2 = pneg %p967_p0 }
  0x18   : > { %s755_s21 = scalar_lea.hbm %s1106_s2, 8192  ;;  %p756_p4 = scmp.lt.u32.totalorder %s961_s6, %s1106_s2 }
  0x19   : > { %p753_p3 = pnand %p752_p2, %p751_p1  ;;  %p757_p6 = scmp.lt.u32.totalorder %s755_s21, %s750_s11 }
  0x1a   : > { %p759_p10 = scmp.lt.u32.totalorder %s750_s11, %s961_s6 }
  0x1b   : > { %p754_p5 = pneg %p753_p3  ;;  %p758_p7 = por %p757_p6, %p756_p4 }
  0x1d   : > { %p760_p13 = por %p759_p10, %p758_p7 }
  0x1f   : > { %p761_p12 = pnand %p760_p13, %p754_p5 }
  0x21   : > { %764 = shalt.err (!%p761_p12)
}
  0x22   : > { %s765_s28 = scalar_lea.vmem %s963_s8, 4096  ;;  %s864_s29 = smov [#allocation4]  }
  0x23   : > { %p766_p1 = scmp.ne.s32.totalorder %s963_s8, %s765_s28  ;;  %s770_s30 = sshll.u32 %s864_s29, 4  ;;  %s771_s30 = int_to_ptr.vmem [resolvable:$false] %s770_s30 }
  0x24   : > { %s772_s4 = scalar_lea.vmem %s771_s30, 8192  ;;  %p773_p9 = scmp.lt.s32.totalorder %s963_s8, %s771_s30 }
  0x25   : > { %p768_p3 = pnand %p766_p1, %p752_p2  ;;  %p774_p4 = scmp.lt.s32.totalorder %s772_s4, %s765_s28 }
  0x27   : > { %p769_p11 = pneg %p768_p3  ;;  %p775_p6 = por %p774_p4, %p773_p9 }
  0x29   : > { %p776_p7 = pnand %p775_p6, %p769_p11 }
  0x2b   : > { %779 = shalt.err (!%p776_p7)
}
  0x2c   : > { %s865_s5 = smov 512   ;;  %s866_s7 = smov 256  }
  0x2d   : > { %s867_s11 = smov 16   ;;  %p603_p12 = scmp.ge.s32.totalorder %s862_s17, 1 }
  0x2e   : > { %684 = dma.hbm_to_vmem [thread:$0]  (!%p967_p0), %s961_s6, 4096, %s963_s8, %s971_s10, %s865_s5, %s866_s7, %s867_s11  }
  0x2f   : > { %p182_p2 = scmp.lt.s32.totalorder %s862_s17, 3 }
  0x31   : > { %p183_p5 = pnand %p603_p12, %p182_p2 }
  0x32   : > { %s1002_s18 = sand.u32 (!%p183_p5), 1, %s846_s13  }
  0x33   : > { %186 = sbr.rel (%p183_p5) target bundleno = 340 (0x154), region = 32  ;;  %s604_s19 = sshll.u32 (!%p183_p5), %s1002_s18, 8 }
  0x34   : > { %s189_s21 = scalar_lea.sflag (!%p183_p5), [#allocation5], %s1002_s18  ;;  %s1006_s22 = scalar_lea.vmem (!%p183_p5), [#allocation4], %s604_s19 }
  0x3a   : > { %833 = dma.done.wait (%p939_p8), %s189_s21, 4096  }
  0x3b   : > { %835 = vsyncadd (%p939_p8), %s189_s21, 4294963200  ;;  %v868_v0 = vmov 0.0   ;;  %v869_v1 = vmov 0   ;;  %v236_v2 = vld [vmem:[%s1006_s22 + $0x8] sm:$0xff]  ;;  %v238_v3 = vld [vmem:[%s1006_s22 + $0x18] sm:$0xff]  ;;  %s605_s10 = sshll.u32 %s1002_s18, 4 }
  0x3c   : > { %442 = vmatprep.mubr.f32.mxu1 %v868_v0  ;;  %333 = vmatprep.mubr.f32.mxu0 %v868_v0  ;;  %v235_v4 = vld [vmem:[%s1006_s22] sm:$0xff]  ;;  %v345_v5 = vmul.f32 %v236_v2, %v236_v2  ;;  %v347_v6 = vmul.f32 %v238_v3, %v238_v3  ;;  %v237_v7 = vld [vmem:[%s1006_s22 + $0x10] sm:$0xff]  ;;  %v240_v9 = vld [vmem:[%s1006_s22 + $0x28] sm:$0xff]  ;;  %v613_v11 = vpack.c.bf16 %v238_v3, %v236_v2  ;;  %s612_s23 = sshll.u32 %s854_s15, 8  ;;  %s218_s28 = scalar_lea.vmem [#allocation7], %s605_s10 }
  0x3d   : > { %745 = vset.pattern.permute.xlu0 %v869_v1  ;;  %v344_v8 = vmul.f32 %v235_v4, %v235_v4  ;;  %v242_v10 = vld [vmem:[%s1006_s22 + $0x38] sm:$0xff]  ;;  %v346_v12 = vmul.f32 %v237_v7, %v237_v7  ;;  %v349_v13 = vmul.f32 %v240_v9, %v240_v9  ;;  %v239_v15 = vld [vmem:[%s1006_s22 + $0x20] sm:$0xff]  ;;  %v241_v16 = vld [vmem:[%s1006_s22 + $0x30] sm:$0xff]  ;;  %v615_v18 = vpack.c.bf16 %v237_v7, %v235_v4  ;;  %s499_s29 = sshll.u32 %s218_s28, 4  ;;  %s1055_s5 = scalar_lea.hbm %s1107_s3, %s612_s23  ;;  %s1057_s29 = int_to_ptr.vmem [resolvable:$true] %s499_s29 }
  0x3e   : > { %v351_v14 = vmul.f32 %v242_v10, %v242_v10  ;;  %v244_v17 = vld [vmem:[%s1006_s22 + $0x48] sm:$0xff]  ;;  %v645_v19 = vpack.c.bf16 %v347_v6, %v345_v5  ;;  %v348_v20 = vmul.f32 %v239_v15, %v239_v15  ;;  %v350_v21 = vmul.f32 %v241_v16, %v241_v16  ;;  %v246_v22 = vld [vmem:[%s1006_s22 + $0x58] sm:$0xff]  ;;  %v243_v24 = vld [vmem:[%s1006_s22 + $0x40] sm:$0xff]  ;;  %614 = vmatprep.subr.bf16.mxu0 %v613_v11  ;;  %s485_s7 = scalar_lea.sflag [#allocation6], %s1002_s18  ;;  %s780_s11 = scalar_lea.vmem %s1057_s29, 256 }
  0x3f   : > { %v353_v23 = vmul.f32 %v244_v17, %v244_v17  ;;  %v245_v25 = vld [vmem:[%s1006_s22 + $0x50] sm:$0xff]  ;;  %v647_v26 = vpack.c.bf16 %v346_v12, %v344_v8  ;;  %v355_v28 = vmul.f32 %v246_v22, %v246_v22  ;;  %v248_v29 = vld [vmem:[%s1006_s22 + $0x68] sm:$0xff]  ;;  %v250_v30 = vld [vmem:[%s1006_s22 + $0x78] sm:$0xff]  ;;  %616 = vmatpush1.bf16.msra.mxu0 %v615_v18  ;;  %v352_v32 = vmul.f32 %v243_v24, %v243_v24  ;;  %p781_p8 = scmp.ne.s32.totalorder %s1057_s29, %s780_s11  ;;  %p1114_p9 = scmp.ne.s32.totalorder %s1111_s25, 0 }
  0x40   : > { %v649_v27 = vpack.c.bf16 %v351_v14, %v349_v13  ;;  %646 = vmatprep.subr.bf16.mxu1 %v645_v19  ;;  %v651_v31 = vpack.c.bf16 %v350_v21, %v348_v20  ;;  %v354_v33 = vmul.f32 %v245_v25, %v245_v25  ;;  %v357_v34 = vmul.f32 %v248_v29, %v248_v29  ;;  %v247_v36 = vld [vmem:[%s1006_s22 + $0x60] sm:$0xff]  ;;  %v249_v37 = vld [vmem:[%s1006_s22 + $0x70] sm:$0xff]  ;;  %v252_v40 = vld [vmem:[%s1006_s22 + $0x88] sm:$0xff]  ;;  %s871_s15 = smov [#allocation7]  }
  0x41   : > { %648 = vmatpush1.bf16.msra.mxu1 %v647_v26  ;;  %v359_v35 = vmul.f32 %v250_v30, %v250_v30  ;;  %v617_v38 = vpack.c.bf16 %v242_v10, %v240_v9  ;;  %v653_v39 = vpack.c.bf16 %v355_v28, %v353_v23  ;;  %v254_v41 = vld [vmem:[%s1006_s22 + $0x98] sm:$0xff]  ;;  %v619_v42 = vpack.c.bf16 %v241_v16, %v239_v15  ;;  %v251_v48 = vld [vmem:[%s1006_s22 + $0x80] sm:$0xff]  ;;  %v253_v49 = vld [vmem:[%s1006_s22 + $0x90] sm:$0xff]  ;;  %p782_p11 = pnand %p781_p8, %p1114_p9  ;;  %s784_s19 = sshll.u32 %s871_s15, 4  ;;  %s785_s19 = int_to_ptr.vmem [resolvable:$false] %s784_s19 }
  0x42   : > { %650 = vmatprep.subr.bf16.mxu1 %v649_v27  ;;  %v356_v43 = vmul.f32 %v247_v36, %v247_v36  ;;  %v358_v44 = vmul.f32 %v249_v37, %v249_v37  ;;  %v621_v45 = vpack.c.bf16 %v246_v22, %v244_v17  ;;  %v655_v46 = vpack.c.bf16 %v354_v33, %v352_v32  ;;  %v256_v53 = vld [vmem:[%s1006_s22 + $0xa8] sm:$0xff]  ;;  %v258_v54 = vld [vmem:[%s1006_s22 + $0xb8] sm:$0xff]  ;;  %v464_v56 = vld [vmem:[%s1104_s0] sm:$0xff]  ;;  %s786_s21 = scalar_lea.vmem %s785_s19, 512  ;;  %p787_p10 = scmp.lt.s32.totalorder %s1057_s29, %s785_s19 }
  0x43   : > { %618 = vmatprep.subr.bf16.mxu0 %v617_v38  ;;  %v657_v47 = vpack.c.bf16 %v359_v35, %v357_v34  ;;  %v623_v50 = vpack.c.bf16 %v245_v25, %v243_v24  ;;  %v361_v51 = vmul.f32 %v252_v40, %v252_v40  ;;  %v363_v52 = vmul.f32 %v254_v41, %v254_v41  ;;  %v255_v62 = vld [vmem:[%s1006_s22 + $0xa0] sm:$0xff]  ;;  %v257_v1 = vld [vmem:[%s1006_s22 + $0xb0] sm:$0xff]  ;;  %v260_v3 = vld [vmem:[%s1006_s22 + $0xc8] sm:$0xff]  ;;  %p783_p0 = pneg %p782_p11  ;;  %p788_p13 = scmp.lt.s32.totalorder %s786_s21, %s780_s11 }
  0x44   : > { %620 = vmatpush1.bf16.msra.mxu0 %v619_v42  ;;  %v625_v55 = vpack.c.bf16 %v250_v30, %v248_v29  ;;  %467 = vperm.xlu0 %745, %v464_v56   ;;  %v659_v57 = vpack.c.bf16 %v358_v44, %v356_v43  ;;  %v360_v58 = vmul.f32 %v251_v48, %v251_v48  ;;  %v262_v4 = vld [vmem:[%s1006_s22 + $0xd8] sm:$0xff]  ;;  %v259_v9 = vld [vmem:[%s1006_s22 + $0xc0] sm:$0xff]  ;;  %v261_v10 = vld [vmem:[%s1006_s22 + $0xd0] sm:$0xff]  ;;  %v472_v43 = vlaneseq }
  0x45   : > { %652 = vmatpush1.bf16.msra.mxu1 %v651_v31  ;;  %622 = vmatprep.subr.bf16.mxu0 %v621_v45  ;;  %v362_v59 = vmul.f32 %v253_v49, %v253_v49  ;;  %v365_v60 = vmul.f32 %v256_v53, %v256_v53  ;;  %v367_v61 = vmul.f32 %v258_v54, %v258_v54  ;;  %v264_v14 = vld [vmem:[%s1006_s22 + $0xe8] sm:$0xff]  ;;  %v266_v16 = vld [vmem:[%s1006_s22 + $0xf8] sm:$0xff]  ;;  %v263_v24 = vld [vmem:[%s1006_s22 + $0xe0] sm:$0xff]  ;;  %p789_p1 = por %p788_p13, %p787_p10 }
  0x46   : > { %654 = vmatprep.subr.bf16.mxu1 %v653_v39  ;;  %v627_v63 = vpack.c.bf16 %v249_v37, %v247_v36  ;;  %v661_v0 = vpack.c.bf16 %v363_v52, %v361_v51  ;;  %v629_v2 = vpack.c.bf16 %v254_v41, %v252_v40  ;;  %v364_v6 = vmul.f32 %v255_v62, %v255_v62  ;;  %v265_v25 = vld [vmem:[%s1006_s22 + $0xf0] sm:$0xff] }
  0x47   : > { %v663_v5 = vpack.c.bf16 %v362_v59, %v360_v58  ;;  %v665_v7 = vpack.c.bf16 %v367_v61, %v365_v60  ;;  %v366_v8 = vmul.f32 %v257_v1, %v257_v1  ;;  %v631_v11 = vpack.c.bf16 %v253_v49, %v251_v48  ;;  %v234_v35 = vld [vmem:[%s1105_s1] sm:$0xff]  ;;  %p790_p3 = pnand %p789_p1, %p783_p0 }
  0x48   : > { %624 = vmatpush1.bf16.msra.mxu0 %v623_v50  ;;  %v369_v12 = vmul.f32 %v260_v3, %v260_v3  ;;  %v371_v13 = vmul.f32 %v262_v4, %v262_v4  ;;  %v633_v15 = vpack.c.bf16 %v258_v54, %v256_v53  ;;  %v368_v17 = vmul.f32 %v259_v9, %v259_v9 }
  0x49   : > { %656 = vmatpush1.bf16.msra.mxu1 %v655_v46  ;;  %626 = vmatprep.subr.bf16.mxu0 %v625_v55  ;;  %v370_v18 = vmul.f32 %v261_v10, %v261_v10  ;;  %v667_v19 = vpack.c.bf16 %v366_v8, %v364_v6  ;;  %v373_v20 = vmul.f32 %v264_v14, %v264_v14  ;;  %v870_v36 = vmov 1.0  }
  0x4a   : > { %658 = vmatprep.subr.bf16.mxu1 %v657_v47  ;;  %v635_v21 = vpack.c.bf16 %v257_v1, %v255_v62  ;;  %v669_v22 = vpack.c.bf16 %v371_v13, %v369_v12  ;;  %v375_v23 = vmul.f32 %v266_v16, %v266_v16  ;;  %v637_v26 = vpack.c.bf16 %v262_v4, %v260_v3 }
  0x4b   : > { %v671_v27 = vpack.c.bf16 %v370_v18, %v368_v17  ;;  %v372_v28 = vmul.f32 %v263_v24, %v263_v24  ;;  %v374_v29 = vmul.f32 %v265_v25, %v265_v25  ;;  %v639_v30 = vpack.c.bf16 %v261_v10, %v259_v9 }
  0x4c   : > { %628 = vmatpush1.bf16.msra.mxu0 %v627_v63  ;;  %v673_v31 = vpack.c.bf16 %v375_v23, %v373_v20  ;;  %v641_v32 = vpack.c.bf16 %v266_v16, %v264_v14  ;;  %v643_v34 = vpack.c.bf16 %v265_v25, %v263_v24  ;;  %v473_v44 = vshrl.u32 %v472_v43, 7 }
  0x4d   : > { %660 = vmatpush1.bf16.msra.mxu1 %v659_v57  ;;  %630 = vmatprep.subr.bf16.mxu0 %v629_v2  ;;  %v675_v33 = vpack.c.bf16 %v374_v29, %v372_v28 }
  0x4e   : > { %662 = vmatprep.subr.bf16.mxu1 %v661_v0  ;;  %v474_v46 = vsub.s32 0, %v473_v44 }
  0x50   : > { %632 = vmatpush1.bf16.msra.mxu0 %v631_v11 }
  0x51   : > { %664 = vmatpush1.bf16.msra.mxu1 %v663_v5  ;;  %634 = vmatprep.subr.bf16.mxu0 %v633_v15 }
  0x52   : > { %666 = vmatprep.subr.bf16.mxu1 %v665_v7 }
  0x54   : > { %636 = vmatpush1.bf16.msra.mxu0 %v635_v21 }
  0x55   : > { %668 = vmatpush1.bf16.msra.mxu1 %v667_v19  ;;  %638 = vmatprep.subr.bf16.mxu0 %v637_v26 }
  0x56   : > { %670 = vmatprep.subr.bf16.mxu1 %v669_v22 }
  0x58   : > { %640 = vmatpush1.bf16.msra.mxu0 %v639_v30 }
  0x59   : > { %672 = vmatpush1.bf16.msra.mxu1 %v671_v27  ;;  %642 = vmatprep.subr.bf16.mxu0 %v641_v32 }
  0x5a   : > { %674 = vmatprep.subr.bf16.mxu1 %v673_v31 }
  0x5c   : > { %644 = vmatpush1.bf16.msra.mxu0 %v643_v34 }
  0x5d   : > { %676 = vmatpush1.bf16.msra.mxu1 %v675_v33 }
  0x5f   : > { %334 = vmatmul.mubr.f32.vlgmr.msra.gmra.mrb[0].mxu0 %v234_v35 }
  0x60   : > { %443 = vmatmul.mubr.f32.vlgmr.msra.gmra.mrb[0].mxu1 %v870_v36 }
  0xc3   : > { %v468_v45 = vpop.permute.xlu0 %467 }
 0x132   : > { %v335_v38 = vpop.f32.mrb[0].mxu0 }
 0x133   : > { %v444_v37 = vpop.f32.mrb[0].mxu1  ;;  %v337_v41 = vpop.f32.mrb[1].mxu0  ;;  %v470_v47 = vmul.f32 %v468_v45, %v335_v38 }
 0x134   : > { %v458_v39 = vmax.f32 %v444_v37, 1e-24  ;;  %v446_v40 = vpop.f32.mrb[1].mxu1  ;;  %v471_v49 = vmul.f32 %v468_v45, %v337_v41 }
 0x135   : > { %v459_v42 = vmax.f32 %v446_v40, 1e-24 }
 0x136   : > { %746 = vrsqrt.f32 %v458_v39 }
 0x137   : > { %748 = vrsqrt.f32 %v459_v42 }
 0x140   : > { %v747_v48 = vpop.eup %746 }
 0x141   : > { %v749_v50 = vpop.eup %748  ;;  %v475_v51 = vrot.slane %v747_v48, %v474_v46 }
 0x142   : > { %v479_v52 = vrot.slane %v749_v50, %v474_v46 }
 0x143   : > { %v480_v53 = vmul.f32 %v475_v51, %v470_v47 }
 0x144   : > { %v481_v54 = vmul.f32 %v479_v52, %v471_v49 }
 0x145   : > { %482 = vst [vmem:[%s218_s28] sm:$0xff] %v480_v53 }
 0x146   : > { %483 = vst [vmem:[%s218_s28 + $0x8] sm:$0xff] %v481_v54 }
 0x147   : > { %793 = shalt.err (!%p790_p3)
}
 0x148   : > { %s794_s18 = scalar_lea.hbm %s1055_s5, 256  ;;  %s798_s6 = scalar_lea.hbm %s1107_s3, 512 }
 0x149   : > { %p795_p4 = scmp.ne.s32.totalorder %s1055_s5, %s794_s18  ;;  %p799_p12 = scmp.lt.u32.totalorder %s1055_s5, %s1107_s3 }
 0x14a   : > { %p800_p2 = scmp.lt.u32.totalorder %s798_s6, %s794_s18  ;;  %p802_p8 = scmp.lt.u32.totalorder %s794_s18, %s1055_s5 }
 0x14b   : > { %p796_p6 = pnand %p795_p4, %p1114_p9 }
 0x14c   : > { %p801_p5 = por %p800_p2, %p799_p12 }
 0x14d   : > { %p797_p7 = pneg %p796_p6 }
 0x14e   : > { %p803_p11 = por %p802_p8, %p801_p5 }
 0x150   : > { %p804_p0 = pnand %p803_p11, %p797_p7 }
 0x152   : > { %807 = shalt.err (!%p804_p0)
}
 0x153   : > { %679 = dma.vmem_to_hbm [thread:$0]  (%p1114_p9), %s1057_s29, 256, %s1055_s5, %s485_s7  }
 0x154 PF: > { %s511_s10 = sand.u32 1, %s842_s12   ;;  %p1115_p10 = scmp.ne.s32.totalorder %s1112_s27, 0 }
 0x155   : > { %p1116_p13 = scmp.ge.s32.totalorder %s862_s17, 2  ;;  %s512_s23 = scalar_lea.sflag [#allocation6], %s511_s10 }
 0x157   : > { %p686_p1 = pnand %p1116_p13, %p1115_p10 }
 0x159   : > { %837 = dma.done.wait (!%p686_p1), %s512_s23, 256  }
 0x15a   : > { %839 = vsyncadd (!%p686_p1), %s512_s23, 4294967040  ;;  %s19_s17 = sadd.s32 1, %s862_s17   ;;  %s1117_s12 = smov %s846_s13 }
 0x15b   : > { %p16_p3 = scmp.ge.s32.totalorder %s19_s17, 4   ;;  %s1118_s13 = smov %s850_s14 }
 0x15c   : > { %s1119_s14 = smov %s948_s26  ;;  %s1120_s15 = smov %s858_s16 }
 0x15d   : > { %s1121_s16 = smov %s1123_s20  ;;  %18 = sbr.rel (!%p16_p3) target bundleno = 6 (0x6), region = 88 }
 0x164   :  { %517 = vsyncpa [#allocation5], 1 }
 0x165   :  { %519 = vsyncpa [#allocation5 + $0x1], 1 }
 0x166   :  { %520 = vsyncpa [#allocation6], 1 }
 0x167   :  { %522 = vsyncpa [#allocation6 + $0x1], 1 }

</bundles_post_ra>
